<compile_context>
chip_gen: v5e
topology: v5e:2x2
jax: 0.10.0
libtpu: 0.0.40
codegen_flags: <defaults>
</compile_context>

<pallas_src>
from functools import partial
import random

import numpy as np
import jax
import jax.numpy as jnp
from jax import lax
from jax.experimental import pallas as pl
from jax.experimental.pallas import tpu as pltpu


def _freq_mask_scatter_kernel(starts_ref, lens_ref, img_ref, o_ref, zrow_ref, sem):
    # starts_ref / lens_ref: SMEM int32[(masks,)] scalar-prefetch operands.
    # img_ref / o_ref: raw HBM refs (C, MEL, TIME); o_ref is aliased to img_ref,
    #   so every byte we do NOT DMA keeps its input value (channels c>0, rows
    #   outside the bands).
    # zrow_ref: VMEM (1, TIME) scratch, filled with zeros once and reused as the
    #   source of every row-write DMA.
    # sem: single shared DMA semaphore.
    del img_ref  # never read: aliasing preserves everything we don't overwrite
    mel = o_ref.shape[1]

    # Zero source row (written once; DMA source for every masked row).
    zrow_ref[...] = jnp.zeros_like(zrow_ref)

    n_masks = starts_ref.shape[0]

    def band(i):
        # Clamp defensively so bad host scalars can't produce an OOB DMA.
        s = jnp.maximum(starts_ref[i], 0)
        l = jnp.maximum(jnp.minimum(lens_ref[i], mel - s), 0)
        return s, l

    # ---- Phase 1: issue one row-sized zero-write DMA per masked mel row. ----
    # All copies share `sem` and are left in flight so they fully overlap.
    total = jnp.int32(0)
    for i in range(n_masks):                 # static unroll over mask slots
        s, l = band(i)

        @pl.loop(0, l)                       # dynamic trip count (0 => no-op)
        def _issue(j, s=s):
            pltpu.make_async_copy(
                zrow_ref,
                o_ref.at[0, pl.ds(s + j, 1), :],   # img[0, row, :] in HBM
                sem,
            ).start()

        total = total + l

    # ---- Phase 2: drain.  Every copy has identical size, so `total` waits on
    # the shared semaphore account for all issued copies; the kernel cannot
    # exit before the last zero row has landed in HBM.
    @pl.loop(0, total)
    def _drain(_):
        pltpu.make_async_copy(zrow_ref, o_ref.at[0, pl.ds(0, 1), :], sem).wait()


@partial(jax.jit, donate_argnums=(2,))
def _freq_mask_call(starts, lens, img):
    C, MEL, TIME = img.shape
    grid_spec = pltpu.PrefetchScalarGridSpec(
        num_scalar_prefetch=2,
        grid=(1,),
        in_specs=[pl.BlockSpec(memory_space=pl.ANY)],    # img stays in HBM
        out_specs=pl.BlockSpec(memory_space=pl.ANY),     # aliased to img
        scratch_shapes=[
            pltpu.VMEM((1, TIME), img.dtype),            # zero source row
            pltpu.SemaphoreType.DMA,                     # shared DMA semaphore
        ],
    )
    return pl.pallas_call(
        _freq_mask_scatter_kernel,
        out_shape=jax.ShapeDtypeStruct(img.shape, img.dtype),
        grid_spec=grid_spec,
        # Alias img (input index 2: after the two scalar-prefetch operands) to
        # the output.  With donation under jit this makes the op truly in-place;
        # if a caller keeps img alive XLA inserts a defensive copy and the
        # result is still correct (only the "no c>0 traffic" guarantee weakens).
        input_output_aliases={2: 0},
        compiler_params=pltpu.CompilerParams(
            dimension_semantics=("arbitrary",)),
    )(starts, lens, img)


def freq_mask_pallas(img, starts, lens):
    """img: (C, MEL, TIME) jax array.  starts/lens: int32[(masks,)] host scalars.

    NOTE: when any mask is active, img's device buffer is donated (aliased to
    the output); callers must not reuse `img` afterwards.
    """
    starts = np.asarray(starts, dtype=np.int32)
    lens = np.asarray(lens, dtype=np.int32)
    if not np.any(lens > 0):
        # `random.random() > p` branch (or every f == 0): output is bit-identical
        # to the input -> skip the kernel and all HBM traffic entirely.
        return img
    return _freq_mask_call(jnp.asarray(starts), jnp.asarray(lens), img)


def sample_freq_mask_params(n_mel, p=0.2, F=20, masks=8, rng=random):
    """Host-side replica of the PyTorch module's random control flow.

    Returns (starts, lens) int32 arrays of fixed length `masks`; unused slots
    (including the 'do not apply' case and f == 0 masks) get length 0.
    """
    starts = np.zeros((masks,), dtype=np.int32)
    lens = np.zeros((masks,), dtype=np.int32)
    if rng.random() > p:                       # skip masking entirely
        return starts, lens
    num_masks = rng.randint(1, masks)
    for i in range(num_masks):
        f = rng.randint(0, F)
        f_zero = rng.randint(0, n_mel - f)
        if f == 0:
            continue
        starts[i] = f_zero
        lens[i] = f
    return starts, lens


def freq_mask_reference(img_np, starts, lens):
    out = np.array(img_np, copy=True)
    for s, l in zip(np.asarray(starts), np.asarray(lens)):
        if l > 0:
            out[0, s:s + l, :] = 0.0
    return out


if __name__ == "__main__":
    # Small shapes: C=2 "samples", 32 mel channels, 128 time frames.
    C, MEL, TIME = 2, 32, 128
    key = jax.random.PRNGKey(0)
    k1, k2 = jax.random.split(key)

    # ---- Case 1: module-style sampled masks (p=1.0 so masking is exercised).
    img = jax.random.normal(k1, (C, MEL, TIME), dtype=jnp.float32)
    img_np = np.asarray(img)                   # host copy BEFORE donation
    rng = random.Random(0)
    starts, lens = sample_freq_mask_params(MEL, p=1.0, F=20, masks=8, rng=rng)
    if not np.any(lens > 0):
        # Vanishingly unlikely (all f draws == 0); force one mask so the kernel
        # path is exercised deterministically.
        starts = np.array([4, 0, 0, 0, 0, 0, 0, 0], np.int32)
        lens = np.array([6, 0, 0, 0, 0, 0, 0, 0], np.int32)
    out = jax.block_until_ready(freq_mask_pallas(img, starts, lens))
    np.testing.assert_allclose(np.asarray(out), freq_mask_reference(img_np, starts, lens),
                               rtol=0, atol=0)

    # ---- Case 2: explicit overlapping bands (concurrent writes to same rows).
    img2 = jax.random.normal(k2, (C, MEL, TIME), dtype=jnp.float32)
    img2_np = np.asarray(img2)
    starts2 = np.array([2, 4, 20, 0, 0, 0, 0, 0], np.int32)
    lens2 = np.array([5, 6, 3, 0, 0, 0, 0, 0], np.int32)
    out2 = jax.block_until_ready(freq_mask_pallas(img2, starts2, lens2))
    np.testing.assert_allclose(np.asarray(out2), freq_mask_reference(img2_np, starts2, lens2),
                               rtol=0, atol=0)

    # ---- Host fast path: all-zero lens -> same array object, no kernel launch.
    no_mask = np.zeros((8,), np.int32)
    out3 = freq_mask_pallas(out, no_mask, no_mask)
    assert out3 is out

    print("KERNEL_OK")
</pallas_src>

<mosaic_0001>
module attributes {stable_mosaic.version = 11 : i64} {
  func.func @_freq_mask_scatter_kernel(%arg0: i32, %arg1: memref<8xi32, #tpu.memory_space<smem>>, %arg2: memref<8xi32, #tpu.memory_space<smem>>, %arg3: memref<2x32x128xf32, #tpu.memory_space<any>>, %arg4: memref<2x32x128xf32, #tpu.memory_space<any>>, %arg5: memref<1x128xf32, #tpu.memory_space<vmem>>, %arg6: memref<!tpu.dma_semaphore, #tpu.memory_space<semaphore_mem>>) attributes {dimension_semantics = [#tpu.dimension_semantics<arbitrary>], iteration_bounds = array<i64: 1>, scalar_prefetch = 2 : i64, scratch_operands = 2 : i64, tpu.core_type = #tpu.core_type<tc>, window_params = [{}, {}]} {
    %cst = arith.constant 0.000000e+00 : f32
    %0 = vector.broadcast %cst : f32 to vector<1x128xf32>
    %c0 = arith.constant 0 : index
    %c0_0 = arith.constant 0 : index
    %1 = vector.load %arg5[%c0, %c0_0] : memref<1x128xf32, #tpu.memory_space<vmem>>, vector<1x128xf32>
    tpu.vector_store %arg5[%c0, %c0_0], %0 {strides = array<i32>} : memref<1x128xf32, #tpu.memory_space<vmem>>, vector<1x128xf32>,
    %c0_1 = arith.constant 0 : index
    %2 = memref.load %arg1[%c0_1] : memref<8xi32, #tpu.memory_space<smem>>
    %c0_i32 = arith.constant 0 : i32
    %3 = arith.maxsi %2, %c0_i32 : i32
    %c0_2 = arith.constant 0 : index
    %4 = memref.load %arg2[%c0_2] : memref<8xi32, #tpu.memory_space<smem>>
    %c32_i32 = arith.constant 32 : i32
    %5 = arith.subi %c32_i32, %3 : i32
    %6 = arith.minsi %4, %5 : i32
    %c0_i32_3 = arith.constant 0 : i32
    %7 = arith.maxsi %6, %c0_i32_3 : i32
    %c0_i32_4 = arith.constant 0 : i32
    %8 = arith.subi %7, %c0_i32_4 : i32
    %c1_i32 = arith.constant 1 : i32
    %c1_i32_5 = arith.constant 1 : i32
    %9 = arith.subi %c1_i32, %c1_i32_5 : i32
    %10 = arith.addi %8, %9 : i32
    %c1_i32_6 = arith.constant 1 : i32
    %11 = arith.divsi %10, %c1_i32_6 : i32
    %c1_i32_7 = arith.constant 1 : i32
    %c0_i32_8 = arith.constant 0 : i32
    %c0_i32_9 = arith.constant 0 : i32
    %12 = arith.subi %11, %c0_i32_9 : i32
    %13 = arith.addi %c0_i32_9, %12 : i32
    %c1_i32_10 = arith.constant 1 : i32
    scf.for %arg7 = %c0_i32_9 to %13 step %c1_i32_10  : i32 {
      %112 = arith.muli %arg7, %c1_i32_7 : i32
      %113 = arith.addi %c0_i32_8, %112 : i32
      %114 = arith.addi %3, %113 : i32
      %c0_i32_104 = arith.constant 0 : i32
      %c0_i32_105 = arith.constant 0 : i32
      %115 = tpu.memref_slice %arg4[%c0_i32_104, %114, %c0_i32_105] : memref<2x32x128xf32, #tpu.memory_space<any>> -> memref<1x1x128xf32, #tpu.memory_space<any>>
      %116 = tpu.memref_squeeze %115 : memref<1x1x128xf32, #tpu.memory_space<any>> -> memref<1x128xf32, #tpu.memory_space<any>>
      tpu.enqueue_dma source(%arg5 : memref<1x128xf32, #tpu.memory_space<vmem>>) target(%116 : memref<1x128xf32, #tpu.memory_space<any>>) target_semaphore(%arg6 : memref<!tpu.dma_semaphore, #tpu.memory_space<semaphore_mem>>)
    }
    %c0_i32_11 = arith.constant 0 : i32
    %14 = arith.addi %c0_i32_11, %7 : i32
    %c1 = arith.constant 1 : index
    %15 = memref.load %arg1[%c1] : memref<8xi32, #tpu.memory_space<smem>>
    %c0_i32_12 = arith.constant 0 : i32
    %16 = arith.maxsi %15, %c0_i32_12 : i32
    %c1_13 = arith.constant 1 : index
    %17 = memref.load %arg2[%c1_13] : memref<8xi32, #tpu.memory_space<smem>>
    %c32_i32_14 = arith.constant 32 : i32
    %18 = arith.subi %c32_i32_14, %16 : i32
    %19 = arith.minsi %17, %18 : i32
    %c0_i32_15 = arith.constant 0 : i32
    %20 = arith.maxsi %19, %c0_i32_15 : i32
    %c0_i32_16 = arith.constant 0 : i32
    %21 = arith.subi %20, %c0_i32_16 : i32
    %c1_i32_17 = arith.constant 1 : i32
    %c1_i32_18 = arith.constant 1 : i32
    %22 = arith.subi %c1_i32_17, %c1_i32_18 : i32
    %23 = arith.addi %21, %22 : i32
    %c1_i32_19 = arith.constant 1 : i32
    %24 = arith.divsi %23, %c1_i32_19 : i32
    %c1_i32_20 = arith.constant 1 : i32
    %c0_i32_21 = arith.constant 0 : i32
    %c0_i32_22 = arith.constant 0 : i32
    %25 = arith.subi %24, %c0_i32_22 : i32
    %26 = arith.addi %c0_i32_22, %25 : i32
    %c1_i32_23 = arith.constant 1 : i32
    scf.for %arg7 = %c0_i32_22 to %26 step %c1_i32_23  : i32 {
      %112 = arith.muli %arg7, %c1_i32_20 : i32
      %113 = arith.addi %c0_i32_21, %112 : i32
      %114 = arith.addi %16, %113 : i32
      %c0_i32_104 = arith.constant 0 : i32
      %c0_i32_105 = arith.constant 0 : i32
      %115 = tpu.memref_slice %arg4[%c0_i32_104, %114, %c0_i32_105] : memref<2x32x128xf32, #tpu.memory_space<any>> -> memref<1x1x128xf32, #tpu.memory_space<any>>
      %116 = tpu.memref_squeeze %115 : memref<1x1x128xf32, #tpu.memory_space<any>> -> memref<1x128xf32, #tpu.memory_space<any>>
      tpu.enqueue_dma source(%arg5 : memref<1x128xf32, #tpu.memory_space<vmem>>) target(%116 : memref<1x128xf32, #tpu.memory_space<any>>) target_semaphore(%arg6 : memref<!tpu.dma_semaphore, #tpu.memory_space<semaphore_mem>>)
    }
    %27 = arith.addi %14, %20 : i32
    %c2 = arith.constant 2 : index
    %28 = memref.load %arg1[%c2] : memref<8xi32, #tpu.memory_space<smem>>
    %c0_i32_24 = arith.constant 0 : i32
    %29 = arith.maxsi %28, %c0_i32_24 : i32
    %c2_25 = arith.constant 2 : index
    %30 = memref.load %arg2[%c2_25] : memref<8xi32, #tpu.memory_space<smem>>
    %c32_i32_26 = arith.constant 32 : i32
    %31 = arith.subi %c32_i32_26, %29 : i32
    %32 = arith.minsi %30, %31 : i32
    %c0_i32_27 = arith.constant 0 : i32
    %33 = arith.maxsi %32, %c0_i32_27 : i32
    %c0_i32_28 = arith.constant 0 : i32
    %34 = arith.subi %33, %c0_i32_28 : i32
    %c1_i32_29 = arith.constant 1 : i32
    %c1_i32_30 = arith.constant 1 : i32
    %35 = arith.subi %c1_i32_29, %c1_i32_30 : i32
    %36 = arith.addi %34, %35 : i32
    %c1_i32_31 = arith.constant 1 : i32
    %37 = arith.divsi %36, %c1_i32_31 : i32
    %c1_i32_32 = arith.constant 1 : i32
    %c0_i32_33 = arith.constant 0 : i32
    %c0_i32_34 = arith.constant 0 : i32
    %38 = arith.subi %37, %c0_i32_34 : i32
    %39 = arith.addi %c0_i32_34, %38 : i32
    %c1_i32_35 = arith.constant 1 : i32
    scf.for %arg7 = %c0_i32_34 to %39 step %c1_i32_35  : i32 {
      %112 = arith.muli %arg7, %c1_i32_32 : i32
      %113 = arith.addi %c0_i32_33, %112 : i32
      %114 = arith.addi %29, %113 : i32
      %c0_i32_104 = arith.constant 0 : i32
      %c0_i32_105 = arith.constant 0 : i32
      %115 = tpu.memref_slice %arg4[%c0_i32_104, %114, %c0_i32_105] : memref<2x32x128xf32, #tpu.memory_space<any>> -> memref<1x1x128xf32, #tpu.memory_space<any>>
      %116 = tpu.memref_squeeze %115 : memref<1x1x128xf32, #tpu.memory_space<any>> -> memref<1x128xf32, #tpu.memory_space<any>>
      tpu.enqueue_dma source(%arg5 : memref<1x128xf32, #tpu.memory_space<vmem>>) target(%116 : memref<1x128xf32, #tpu.memory_space<any>>) target_semaphore(%arg6 : memref<!tpu.dma_semaphore, #tpu.memory_space<semaphore_mem>>)
    }
    %40 = arith.addi %27, %33 : i32
    %c3 = arith.constant 3 : index
    %41 = memref.load %arg1[%c3] : memref<8xi32, #tpu.memory_space<smem>>
    %c0_i32_36 = arith.constant 0 : i32
    %42 = arith.maxsi %41, %c0_i32_36 : i32
    %c3_37 = arith.constant 3 : index
    %43 = memref.load %arg2[%c3_37] : memref<8xi32, #tpu.memory_space<smem>>
    %c32_i32_38 = arith.constant 32 : i32
    %44 = arith.subi %c32_i32_38, %42 : i32
    %45 = arith.minsi %43, %44 : i32
    %c0_i32_39 = arith.constant 0 : i32
    %46 = arith.maxsi %45, %c0_i32_39 : i32
    %c0_i32_40 = arith.constant 0 : i32
    %47 = arith.subi %46, %c0_i32_40 : i32
    %c1_i32_41 = arith.constant 1 : i32
    %c1_i32_42 = arith.constant 1 : i32
    %48 = arith.subi %c1_i32_41, %c1_i32_42 : i32
    %49 = arith.addi %47, %48 : i32
    %c1_i32_43 = arith.constant 1 : i32
    %50 = arith.divsi %49, %c1_i32_43 : i32
    %c1_i32_44 = arith.constant 1 : i32
    %c0_i32_45 = arith.constant 0 : i32
    %c0_i32_46 = arith.constant 0 : i32
    %51 = arith.subi %50, %c0_i32_46 : i32
    %52 = arith.addi %c0_i32_46, %51 : i32
    %c1_i32_47 = arith.constant 1 : i32
    scf.for %arg7 = %c0_i32_46 to %52 step %c1_i32_47  : i32 {
      %112 = arith.muli %arg7, %c1_i32_44 : i32
      %113 = arith.addi %c0_i32_45, %112 : i32
      %114 = arith.addi %42, %113 : i32
      %c0_i32_104 = arith.constant 0 : i32
      %c0_i32_105 = arith.constant 0 : i32
      %115 = tpu.memref_slice %arg4[%c0_i32_104, %114, %c0_i32_105] : memref<2x32x128xf32, #tpu.memory_space<any>> -> memref<1x1x128xf32, #tpu.memory_space<any>>
      %116 = tpu.memref_squeeze %115 : memref<1x1x128xf32, #tpu.memory_space<any>> -> memref<1x128xf32, #tpu.memory_space<any>>
      tpu.enqueue_dma source(%arg5 : memref<1x128xf32, #tpu.memory_space<vmem>>) target(%116 : memref<1x128xf32, #tpu.memory_space<any>>) target_semaphore(%arg6 : memref<!tpu.dma_semaphore, #tpu.memory_space<semaphore_mem>>)
    }
    %53 = arith.addi %40, %46 : i32
    %c4 = arith.constant 4 : index
    %54 = memref.load %arg1[%c4] : memref<8xi32, #tpu.memory_space<smem>>
    %c0_i32_48 = arith.constant 0 : i32
    %55 = arith.maxsi %54, %c0_i32_48 : i32
    %c4_49 = arith.constant 4 : index
    %56 = memref.load %arg2[%c4_49] : memref<8xi32, #tpu.memory_space<smem>>
    %c32_i32_50 = arith.constant 32 : i32
    %57 = arith.subi %c32_i32_50, %55 : i32
    %58 = arith.minsi %56, %57 : i32
    %c0_i32_51 = arith.constant 0 : i32
    %59 = arith.maxsi %58, %c0_i32_51 : i32
    %c0_i32_52 = arith.constant 0 : i32
    %60 = arith.subi %59, %c0_i32_52 : i32
    %c1_i32_53 = arith.constant 1 : i32
    %c1_i32_54 = arith.constant 1 : i32
    %61 = arith.subi %c1_i32_53, %c1_i32_54 : i32
    %62 = arith.addi %60, %61 : i32
    %c1_i32_55 = arith.constant 1 : i32
    %63 = arith.divsi %62, %c1_i32_55 : i32
    %c1_i32_56 = arith.constant 1 : i32
    %c0_i32_57 = arith.constant 0 : i32
    %c0_i32_58 = arith.constant 0 : i32
    %64 = arith.subi %63, %c0_i32_58 : i32
    %65 = arith.addi %c0_i32_58, %64 : i32
    %c1_i32_59 = arith.constant 1 : i32
    scf.for %arg7 = %c0_i32_58 to %65 step %c1_i32_59  : i32 {
      %112 = arith.muli %arg7, %c1_i32_56 : i32
      %113 = arith.addi %c0_i32_57, %112 : i32
      %114 = arith.addi %55, %113 : i32
      %c0_i32_104 = arith.constant 0 : i32
      %c0_i32_105 = arith.constant 0 : i32
      %115 = tpu.memref_slice %arg4[%c0_i32_104, %114, %c0_i32_105] : memref<2x32x128xf32, #tpu.memory_space<any>> -> memref<1x1x128xf32, #tpu.memory_space<any>>
      %116 = tpu.memref_squeeze %115 : memref<1x1x128xf32, #tpu.memory_space<any>> -> memref<1x128xf32, #tpu.memory_space<any>>
      tpu.enqueue_dma source(%arg5 : memref<1x128xf32, #tpu.memory_space<vmem>>) target(%116 : memref<1x128xf32, #tpu.memory_space<any>>) target_semaphore(%arg6 : memref<!tpu.dma_semaphore, #tpu.memory_space<semaphore_mem>>)
    }
    %66 = arith.addi %53, %59 : i32
    %c5 = arith.constant 5 : index
    %67 = memref.load %arg1[%c5] : memref<8xi32, #tpu.memory_space<smem>>
    %c0_i32_60 = arith.constant 0 : i32
    %68 = arith.maxsi %67, %c0_i32_60 : i32
    %c5_61 = arith.constant 5 : index
    %69 = memref.load %arg2[%c5_61] : memref<8xi32, #tpu.memory_space<smem>>
    %c32_i32_62 = arith.constant 32 : i32
    %70 = arith.subi %c32_i32_62, %68 : i32
    %71 = arith.minsi %69, %70 : i32
    %c0_i32_63 = arith.constant 0 : i32
    %72 = arith.maxsi %71, %c0_i32_63 : i32
    %c0_i32_64 = arith.constant 0 : i32
    %73 = arith.subi %72, %c0_i32_64 : i32
    %c1_i32_65 = arith.constant 1 : i32
    %c1_i32_66 = arith.constant 1 : i32
    %74 = arith.subi %c1_i32_65, %c1_i32_66 : i32
    %75 = arith.addi %73, %74 : i32
    %c1_i32_67 = arith.constant 1 : i32
    %76 = arith.divsi %75, %c1_i32_67 : i32
    %c1_i32_68 = arith.constant 1 : i32
    %c0_i32_69 = arith.constant 0 : i32
    %c0_i32_70 = arith.constant 0 : i32
    %77 = arith.subi %76, %c0_i32_70 : i32
    %78 = arith.addi %c0_i32_70, %77 : i32
    %c1_i32_71 = arith.constant 1 : i32
    scf.for %arg7 = %c0_i32_70 to %78 step %c1_i32_71  : i32 {
      %112 = arith.muli %arg7, %c1_i32_68 : i32
      %113 = arith.addi %c0_i32_69, %112 : i32
      %114 = arith.addi %68, %113 : i32
      %c0_i32_104 = arith.constant 0 : i32
      %c0_i32_105 = arith.constant 0 : i32
      %115 = tpu.memref_slice %arg4[%c0_i32_104, %114, %c0_i32_105] : memref<2x32x128xf32, #tpu.memory_space<any>> -> memref<1x1x128xf32, #tpu.memory_space<any>>
      %116 = tpu.memref_squeeze %115 : memref<1x1x128xf32, #tpu.memory_space<any>> -> memref<1x128xf32, #tpu.memory_space<any>>
      tpu.enqueue_dma source(%arg5 : memref<1x128xf32, #tpu.memory_space<vmem>>) target(%116 : memref<1x128xf32, #tpu.memory_space<any>>) target_semaphore(%arg6 : memref<!tpu.dma_semaphore, #tpu.memory_space<semaphore_mem>>)
    }
    %79 = arith.addi %66, %72 : i32
    %c6 = arith.constant 6 : index
    %80 = memref.load %arg1[%c6] : memref<8xi32, #tpu.memory_space<smem>>
    %c0_i32_72 = arith.constant 0 : i32
    %81 = arith.maxsi %80, %c0_i32_72 : i32
    %c6_73 = arith.constant 6 : index
    %82 = memref.load %arg2[%c6_73] : memref<8xi32, #tpu.memory_space<smem>>
    %c32_i32_74 = arith.constant 32 : i32
    %83 = arith.subi %c32_i32_74, %81 : i32
    %84 = arith.minsi %82, %83 : i32
    %c0_i32_75 = arith.constant 0 : i32
    %85 = arith.maxsi %84, %c0_i32_75 : i32
    %c0_i32_76 = arith.constant 0 : i32
    %86 = arith.subi %85, %c0_i32_76 : i32
    %c1_i32_77 = arith.constant 1 : i32
    %c1_i32_78 = arith.constant 1 : i32
    %87 = arith.subi %c1_i32_77, %c1_i32_78 : i32
    %88 = arith.addi %86, %87 : i32
    %c1_i32_79 = arith.constant 1 : i32
    %89 = arith.divsi %88, %c1_i32_79 : i32
    %c1_i32_80 = arith.constant 1 : i32
    %c0_i32_81 = arith.constant 0 : i32
    %c0_i32_82 = arith.constant 0 : i32
    %90 = arith.subi %89, %c0_i32_82 : i32
    %91 = arith.addi %c0_i32_82, %90 : i32
    %c1_i32_83 = arith.constant 1 : i32
    scf.for %arg7 = %c0_i32_82 to %91 step %c1_i32_83  : i32 {
      %112 = arith.muli %arg7, %c1_i32_80 : i32
      %113 = arith.addi %c0_i32_81, %112 : i32
      %114 = arith.addi %81, %113 : i32
      %c0_i32_104 = arith.constant 0 : i32
      %c0_i32_105 = arith.constant 0 : i32
      %115 = tpu.memref_slice %arg4[%c0_i32_104, %114, %c0_i32_105] : memref<2x32x128xf32, #tpu.memory_space<any>> -> memref<1x1x128xf32, #tpu.memory_space<any>>
      %116 = tpu.memref_squeeze %115 : memref<1x1x128xf32, #tpu.memory_space<any>> -> memref<1x128xf32, #tpu.memory_space<any>>
      tpu.enqueue_dma source(%arg5 : memref<1x128xf32, #tpu.memory_space<vmem>>) target(%116 : memref<1x128xf32, #tpu.memory_space<any>>) target_semaphore(%arg6 : memref<!tpu.dma_semaphore, #tpu.memory_space<semaphore_mem>>)
    }
    %92 = arith.addi %79, %85 : i32
    %c7 = arith.constant 7 : index
    %93 = memref.load %arg1[%c7] : memref<8xi32, #tpu.memory_space<smem>>
    %c0_i32_84 = arith.constant 0 : i32
    %94 = arith.maxsi %93, %c0_i32_84 : i32
    %c7_85 = arith.constant 7 : index
    %95 = memref.load %arg2[%c7_85] : memref<8xi32, #tpu.memory_space<smem>>
    %c32_i32_86 = arith.constant 32 : i32
    %96 = arith.subi %c32_i32_86, %94 : i32
    %97 = arith.minsi %95, %96 : i32
    %c0_i32_87 = arith.constant 0 : i32
    %98 = arith.maxsi %97, %c0_i32_87 : i32
    %c0_i32_88 = arith.constant 0 : i32
    %99 = arith.subi %98, %c0_i32_88 : i32
    %c1_i32_89 = arith.constant 1 : i32
    %c1_i32_90 = arith.constant 1 : i32
    %100 = arith.subi %c1_i32_89, %c1_i32_90 : i32
    %101 = arith.addi %99, %100 : i32
    %c1_i32_91 = arith.constant 1 : i32
    %102 = arith.divsi %101, %c1_i32_91 : i32
    %c1_i32_92 = arith.constant 1 : i32
    %c0_i32_93 = arith.constant 0 : i32
    %c0_i32_94 = arith.constant 0 : i32
    %103 = arith.subi %102, %c0_i32_94 : i32
    %104 = arith.addi %c0_i32_94, %103 : i32
    %c1_i32_95 = arith.constant 1 : i32
    scf.for %arg7 = %c0_i32_94 to %104 step %c1_i32_95  : i32 {
      %112 = arith.muli %arg7, %c1_i32_92 : i32
      %113 = arith.addi %c0_i32_93, %112 : i32
      %114 = arith.addi %94, %113 : i32
      %c0_i32_104 = arith.constant 0 : i32
      %c0_i32_105 = arith.constant 0 : i32
      %115 = tpu.memref_slice %arg4[%c0_i32_104, %114, %c0_i32_105] : memref<2x32x128xf32, #tpu.memory_space<any>> -> memref<1x1x128xf32, #tpu.memory_space<any>>
      %116 = tpu.memref_squeeze %115 : memref<1x1x128xf32, #tpu.memory_space<any>> -> memref<1x128xf32, #tpu.memory_space<any>>
      tpu.enqueue_dma source(%arg5 : memref<1x128xf32, #tpu.memory_space<vmem>>) target(%116 : memref<1x128xf32, #tpu.memory_space<any>>) target_semaphore(%arg6 : memref<!tpu.dma_semaphore, #tpu.memory_space<semaphore_mem>>)
    }
    %105 = arith.addi %92, %98 : i32
    %c0_i32_96 = arith.constant 0 : i32
    %106 = arith.subi %105, %c0_i32_96 : i32
    %c1_i32_97 = arith.constant 1 : i32
    %c1_i32_98 = arith.constant 1 : i32
    %107 = arith.subi %c1_i32_97, %c1_i32_98 : i32
    %108 = arith.addi %106, %107 : i32
    %c1_i32_99 = arith.constant 1 : i32
    %109 = arith.divsi %108, %c1_i32_99 : i32
    %c1_i32_100 = arith.constant 1 : i32
    %c0_i32_101 = arith.constant 0 : i32
    %c0_i32_102 = arith.constant 0 : i32
    %110 = arith.subi %109, %c0_i32_102 : i32
    %111 = arith.addi %c0_i32_102, %110 : i32
    %c1_i32_103 = arith.constant 1 : i32
    scf.for %arg7 = %c0_i32_102 to %111 step %c1_i32_103  : i32 {
      %112 = arith.muli %arg7, %c1_i32_100 : i32
      %113 = arith.addi %c0_i32_101, %112 : i32
      %c0_i32_104 = arith.constant 0 : i32
      %c0_i32_105 = arith.constant 0 : i32
      %c0_i32_106 = arith.constant 0 : i32
      %114 = tpu.memref_slice %arg4[%c0_i32_104, %c0_i32_105, %c0_i32_106] : memref<2x32x128xf32, #tpu.memory_space<any>> -> memref<1x1x128xf32, #tpu.memory_space<any>>
      %115 = tpu.memref_squeeze %114 : memref<1x1x128xf32, #tpu.memory_space<any>> -> memref<1x128xf32, #tpu.memory_space<any>>
      tpu.wait_dma2 semaphore(%arg6 : memref<!tpu.dma_semaphore, #tpu.memory_space<semaphore_mem>>) src(%arg5 : memref<1x128xf32, #tpu.memory_space<vmem>>) dst(%115 : memref<1x128xf32, #tpu.memory_space<any>>)
    }
    return
  }
}

</mosaic_0001>

<bundles_post_ra>
// kernel: _freq_mask_call.1
= control target key start
LH: loop header
LB: loop body
LE: loop exit
PB: predicated region body
PF: predicated region fallthrough
CT: control target
= control target key end

     0   :  { %s784_s18 = smov [#allocation5]   ;;  %s785_s19 = smov [#allocation6]   ;;  %s975_s0 = inlined_call_operand.hbm [shape: s32[8], index: 0, kind: input, shape index: {}]   ;;  %s976_s2 = inlined_call_operand.hbm [shape: f32[2,32,128], index: 2, kind: input, shape index: {}, may-alias: {2,3}]   ;;  %s977_s3 = inlined_call_operand.hbm [shape: f32[2,32,128], index: 3, kind: output, shape index: {}, may-alias: {2,3}]   ;;  %s978_s1 = inlined_call_operand.hbm [shape: s32[8], index: 1, kind: input, shape index: {}]  }
   0x1   :  { %s9_s14 = sshll.u32 %s975_s0, 4  ;;  %s14_s17 = sshll.u32 %s978_s1, 4  ;;  %s10_s14 = int_to_ptr.hbm [resolvable:$true] %s9_s14  ;;  %s15_s17 = int_to_ptr.hbm [resolvable:$true] %s14_s17 }
   0x2   :  { %12 = dma.hbm_to_smem %s10_s14, 16, %s784_s18, [#allocation4] }
   0x3   :  { %17 = dma.hbm_to_smem %s15_s17, 16, %s785_s19, [#allocation4] }
   0x4   :  { %744 = dma.done.wait [#allocation4], 32 }
   0x5   :  { %745 = vsyncadd [#allocation4], 4294967264 }
   0x6   :  { %20 = sfence }
   0x7   :  { %s22_s2 = sld [smem:[#allocation5]]  ;;  %v786_v0 = vmov 0.0  }
   0x8   :  { %21 = vst [vmem:[#allocation2] sm:$0x1] %v786_v0  ;;  %s25_s20 = sld [smem:[#allocation6]] }
   0xd   :  { %p23_p0 = scmp.gt.s32.totalorder %s22_s2, 0 }
   0xf   :  { %s980_s2 = smov (!%p23_p0, %s22_s2), 0 }
  0x10   :  { %s26_s0 = ssub.s32 32, %s980_s2 }
  0x11   :  { %p27_p1 = scmp.lt.s32.totalorder %s25_s20, %s26_s0 }
  0x13   :  { %s982_s20 = smov (!%p27_p1, %s25_s20), %s26_s0 }
  0x14   :  { %p29_p2 = scmp.gt.s32.totalorder %s982_s20, 0  ;;  %p369_p3 = scmp.le.s32.totalorder %s982_s20, 0 }
  0x15   :  { %s748_s21 = smov (!%p369_p3), 0  }
  0x16   :  { %s824_s1 = scalar_select %p29_p2, %s982_s20, 0 }
  0x17   :  { %302 = sbr.rel (%p369_p3) target bundleno = 49 (0x31), region = 109 }
  0x1c LB: > { %s787_s22 = smov [#allocation2]   ;;  %s37_s24 = sadd.s32 %s750_s21, %s980_s2  ;;  %s750_s21 = sphi %s748_s21, %s34_s21  }
  0x1d   : > { %s46_s23 = sshll.u32 %s787_s22, 4  ;;  %s38_s27 = scalar_lea.hbm %s977_s3, %s37_s24  ;;  %s47_s23 = int_to_ptr.vmem [resolvable:$true] %s46_s23 }
  0x1e   : > { %s48_s28 = sshll.u32 %s38_s27, 4  ;;  %s532_s6 = scalar_lea.hbm %s977_s3, 64  ;;  %s49_s28 = int_to_ptr.hbm [resolvable:$true] %s48_s28 }
  0x1f   : > { %s528_s29 = sshra.s32 %s49_s28, 4  ;;  %s529_s29 = int_to_ptr.hbm [resolvable:$true] %s528_s29 }
  0x20   : > { %s530_s30 = scalar_lea.hbm %s529_s29, 1  ;;  %p533_p5 = scmp.lt.s32.totalorder %s529_s29, %s977_s3 }
  0x21   : > { %p531_p4 = scmp.ne.s32.totalorder %s529_s29, %s530_s30  ;;  %p534_p6 = scmp.lt.s32.totalorder %s532_s6, %s530_s30 }
  0x23   : > { %p535_p7 = por %p534_p6, %p533_p5 }
  0x25   : > { %p536_p8 = pnand %p535_p7, %p531_p4 }
  0x27   : > { %539 = shalt.err (!%p536_p8)  }
  0x28   : > { %51 = dma.vmem_to_hbm [thread:$0]  %s47_s23, 16, %s49_s28, [#allocation3] }
  0x29   : > { %s34_s21 = sadd.s32 1, %s750_s21  }
  0x2a   : > { %p33_p9 = scmp.ge.s32.totalorder %s34_s21, %s824_s1 }
  0x2c   :  { %36 = sbr.rel (!%p33_p9) target bundleno = 28 (0x1c), region = 115 }
  0x31 PF:  { %s346_s9 = sld [smem:[#allocation5 + $0x1]] }
  0x32   :  { %s347_s10 = sld [smem:[#allocation6 + $0x1]] }
  0x37   :  { %p53_p10 = scmp.gt.s32.totalorder %s346_s9, 0 }
  0x39   :  { %s984_s9 = smov (!%p53_p10, %s346_s9), 0 }
  0x3a   :  { %s56_s11 = ssub.s32 32, %s984_s9 }
  0x3b   :  { %p57_p11 = scmp.lt.s32.totalorder %s347_s10, %s56_s11 }
  0x3d   :  { %s986_s10 = smov (!%p57_p11, %s347_s10), %s56_s11 }
  0x3e   :  { %p59_p12 = scmp.gt.s32.totalorder %s986_s10, 0  ;;  %p373_p13 = scmp.le.s32.totalorder %s986_s10, 0 }
  0x3f   :  { %s752_s13 = smov (!%p373_p13), 0  }
  0x40   :  { %s840_s12 = scalar_select %p59_p12, %s986_s10, 0 }
  0x41   :  { %307 = sbr.rel (%p373_p13) target bundleno = 91 (0x5b), region = 120 }
  0x46 LB: > { %s788_s14 = smov [#allocation2]   ;;  %s67_s16 = sadd.s32 %s754_s13, %s984_s9  ;;  %s754_s13 = sphi %s752_s13, %s64_s13  }
  0x47   : > { %s76_s15 = sshll.u32 %s788_s14, 4  ;;  %s68_s19 = scalar_lea.hbm %s977_s3, %s67_s16  ;;  %s77_s15 = int_to_ptr.vmem [resolvable:$true] %s76_s15 }
  0x48   : > { %s78_s2 = sshll.u32 %s68_s19, 4  ;;  %s556_s23 = scalar_lea.hbm %s977_s3, 64  ;;  %s79_s2 = int_to_ptr.hbm [resolvable:$true] %s78_s2 }
  0x49   : > { %s552_s20 = sshra.s32 %s79_s2, 4  ;;  %s553_s20 = int_to_ptr.hbm [resolvable:$true] %s552_s20 }
  0x4a   : > { %s554_s0 = scalar_lea.hbm %s553_s20, 1  ;;  %p557_p1 = scmp.lt.s32.totalorder %s553_s20, %s977_s3 }
  0x4b   : > { %p555_p0 = scmp.ne.s32.totalorder %s553_s20, %s554_s0  ;;  %p558_p2 = scmp.lt.s32.totalorder %s556_s23, %s554_s0 }
  0x4d   : > { %p559_p3 = por %p558_p2, %p557_p1 }
  0x4f   : > { %p560_p4 = pnand %p559_p3, %p555_p0 }
  0x51   : > { %563 = shalt.err (!%p560_p4)  }
  0x52   : > { %81 = dma.vmem_to_hbm [thread:$0]  %s77_s15, 16, %s79_s2, [#allocation3] }
  0x53   : > { %s64_s13 = sadd.s32 1, %s754_s13  }
  0x54   : > { %p63_p5 = scmp.ge.s32.totalorder %s64_s13, %s840_s12 }
  0x56   :  { %66 = sbr.rel (!%p63_p5) target bundleno = 70 (0x46), region = 126 }
  0x5b PF:  { %s82_s26 = sadd.s32 %s840_s12, %s824_s1  ;;  %s349_s27 = sld [smem:[#allocation5 + $0x2]] }
  0x5c   :  { %s350_s28 = sld [smem:[#allocation6 + $0x2]] }
  0x61   :  { %p84_p6 = scmp.gt.s32.totalorder %s349_s27, 0 }
  0x63   :  { %s988_s27 = smov (!%p84_p6, %s349_s27), 0 }
  0x64   :  { %s87_s29 = ssub.s32 32, %s988_s27 }
  0x65   :  { %p88_p7 = scmp.lt.s32.totalorder %s350_s28, %s87_s29 }
  0x67   :  { %s990_s28 = smov (!%p88_p7, %s350_s28), %s87_s29 }
  0x68   :  { %p90_p8 = scmp.gt.s32.totalorder %s990_s28, 0  ;;  %p377_p9 = scmp.le.s32.totalorder %s990_s28, 0 }
  0x69   :  { %s756_s4 = smov (!%p377_p9), 0  }
  0x6a   :  { %s858_s30 = scalar_select %p90_p8, %s990_s28, 0 }
  0x6b   :  { %312 = sbr.rel (%p377_p9) target bundleno = 133 (0x85), region = 131 }
  0x70 LB: > { %s789_s5 = smov [#allocation2]   ;;  %s98_s7 = sadd.s32 %s758_s4, %s988_s27  ;;  %s758_s4 = sphi %s756_s4, %s95_s4  }
  0x71   : > { %s107_s6 = sshll.u32 %s789_s5, 4  ;;  %s99_s10 = scalar_lea.hbm %s977_s3, %s98_s7  ;;  %s108_s6 = int_to_ptr.vmem [resolvable:$true] %s107_s6 }
  0x72   : > { %s109_s11 = sshll.u32 %s99_s10, 4  ;;  %s580_s17 = scalar_lea.hbm %s977_s3, 64  ;;  %s110_s11 = int_to_ptr.hbm [resolvable:$true] %s109_s11 }
  0x73   : > { %s576_s13 = sshra.s32 %s110_s11, 4  ;;  %s577_s13 = int_to_ptr.hbm [resolvable:$true] %s576_s13 }
  0x74   : > { %s578_s14 = scalar_lea.hbm %s577_s13, 1  ;;  %p581_p11 = scmp.lt.s32.totalorder %s577_s13, %s977_s3 }
  0x75   : > { %p579_p10 = scmp.ne.s32.totalorder %s577_s13, %s578_s14  ;;  %p582_p12 = scmp.lt.s32.totalorder %s580_s17, %s578_s14 }
  0x77   : > { %p583_p13 = por %p582_p12, %p581_p11 }
  0x79   : > { %p584_p0 = pnand %p583_p13, %p579_p10 }
  0x7b   : > { %587 = shalt.err (!%p584_p0)  }
  0x7c   : > { %112 = dma.vmem_to_hbm [thread:$0]  %s108_s6, 16, %s110_s11, [#allocation3] }
  0x7d   : > { %s95_s4 = sadd.s32 1, %s758_s4  }
  0x7e   : > { %p94_p1 = scmp.ge.s32.totalorder %s95_s4, %s858_s30 }
  0x80   :  { %97 = sbr.rel (!%p94_p1) target bundleno = 112 (0x70), region = 137 }
  0x85 PF:  { %s875_s2 = sadd.s32 %s858_s30, %s82_s26  ;;  %s352_s20 = sld [smem:[#allocation5 + $0x3]] }
  0x86   :  { %s353_s0 = sld [smem:[#allocation6 + $0x3]] }
  0x8b   :  { %p115_p2 = scmp.gt.s32.totalorder %s352_s20, 0 }
  0x8d   :  { %s992_s20 = smov (!%p115_p2, %s352_s20), 0 }
  0x8e   :  { %s118_s21 = ssub.s32 32, %s992_s20 }
  0x8f   :  { %p119_p3 = scmp.lt.s32.totalorder %s353_s0, %s118_s21 }
  0x91   :  { %s994_s0 = smov (!%p119_p3, %s353_s0), %s118_s21 }
  0x92   :  { %p121_p4 = scmp.gt.s32.totalorder %s994_s0, 0  ;;  %p381_p5 = scmp.le.s32.totalorder %s994_s0, 0 }
  0x93   :  { %s760_s23 = smov (!%p381_p5), 0  }
  0x94   :  { %s880_s22 = scalar_select %p121_p4, %s994_s0, 0 }
  0x95   :  { %317 = sbr.rel (%p381_p5) target bundleno = 175 (0xaf), region = 142 }
  0x9a LB: > { %s790_s1 = smov [#allocation2]   ;;  %s129_s24 = sadd.s32 %s762_s23, %s992_s20  ;;  %s762_s23 = sphi %s760_s23, %s126_s23  }
  0x9b   : > { %s138_s12 = sshll.u32 %s790_s1, 4  ;;  %s130_s27 = scalar_lea.hbm %s977_s3, %s129_s24  ;;  %s139_s12 = int_to_ptr.vmem [resolvable:$true] %s138_s12 }
  0x9c   : > { %s140_s28 = sshll.u32 %s130_s27, 4  ;;  %s604_s6 = scalar_lea.hbm %s977_s3, 64  ;;  %s141_s28 = int_to_ptr.hbm [resolvable:$true] %s140_s28 }
  0x9d   : > { %s600_s29 = sshra.s32 %s141_s28, 4  ;;  %s601_s29 = int_to_ptr.hbm [resolvable:$true] %s600_s29 }
  0x9e   : > { %s602_s30 = scalar_lea.hbm %s601_s29, 1  ;;  %p605_p7 = scmp.lt.s32.totalorder %s601_s29, %s977_s3 }
  0x9f   : > { %p603_p6 = scmp.ne.s32.totalorder %s601_s29, %s602_s30  ;;  %p606_p8 = scmp.lt.s32.totalorder %s604_s6, %s602_s30 }
  0xa1   : > { %p607_p9 = por %p606_p8, %p605_p7 }
  0xa3   : > { %p608_p10 = pnand %p607_p9, %p603_p6 }
  0xa5   : > { %611 = shalt.err (!%p608_p10)  }
  0xa6   : > { %143 = dma.vmem_to_hbm [thread:$0]  %s139_s12, 16, %s141_s28, [#allocation3] }
  0xa7   : > { %s126_s23 = sadd.s32 1, %s762_s23  }
  0xa8   : > { %p125_p11 = scmp.ge.s32.totalorder %s126_s23, %s880_s22 }
  0xaa   :  { %128 = sbr.rel (!%p125_p11) target bundleno = 154 (0x9a), region = 148 }
  0xaf PF:  { %s144_s9 = sadd.s32 %s880_s22, %s875_s2  ;;  %s355_s10 = sld [smem:[#allocation5 + $0x4]] }
  0xb0   :  { %s356_s11 = sld [smem:[#allocation6 + $0x4]] }
  0xb5   :  { %p146_p12 = scmp.gt.s32.totalorder %s355_s10, 0 }
  0xb7   :  { %s996_s10 = smov (!%p146_p12, %s355_s10), 0 }
  0xb8   :  { %s149_s13 = ssub.s32 32, %s996_s10 }
  0xb9   :  { %p150_p13 = scmp.lt.s32.totalorder %s356_s11, %s149_s13 }
  0xbb   :  { %s998_s11 = smov (!%p150_p13, %s356_s11), %s149_s13 }
  0xbc   :  { %p152_p0 = scmp.gt.s32.totalorder %s998_s11, 0  ;;  %p385_p1 = scmp.le.s32.totalorder %s998_s11, 0 }
  0xbd   :  { %s764_s15 = smov (!%p385_p1), 0  }
  0xbe   :  { %s898_s14 = scalar_select %p152_p0, %s998_s11, 0 }
  0xbf   :  { %322 = sbr.rel (%p385_p1) target bundleno = 217 (0xd9), region = 153 }
  0xc4 LB: > { %s791_s16 = smov [#allocation2]   ;;  %s160_s18 = sadd.s32 %s766_s15, %s996_s10  ;;  %s766_s15 = sphi %s764_s15, %s157_s15  }
  0xc5   : > { %s169_s17 = sshll.u32 %s791_s16, 4  ;;  %s161_s0 = scalar_lea.hbm %s977_s3, %s160_s18  ;;  %s170_s17 = int_to_ptr.vmem [resolvable:$true] %s169_s17 }
  0xc6   : > { %s171_s21 = sshll.u32 %s161_s0, 4  ;;  %s628_s25 = scalar_lea.hbm %s977_s3, 64  ;;  %s172_s21 = int_to_ptr.hbm [resolvable:$true] %s171_s21 }
  0xc7   : > { %s624_s23 = sshra.s32 %s172_s21, 4  ;;  %s625_s23 = int_to_ptr.hbm [resolvable:$true] %s624_s23 }
  0xc8   : > { %s626_s1 = scalar_lea.hbm %s625_s23, 1  ;;  %p629_p3 = scmp.lt.s32.totalorder %s625_s23, %s977_s3 }
  0xc9   : > { %p627_p2 = scmp.ne.s32.totalorder %s625_s23, %s626_s1  ;;  %p630_p4 = scmp.lt.s32.totalorder %s628_s25, %s626_s1 }
  0xcb   : > { %p631_p5 = por %p630_p4, %p629_p3 }
  0xcd   : > { %p632_p6 = pnand %p631_p5, %p627_p2 }
  0xcf   : > { %635 = shalt.err (!%p632_p6)  }
  0xd0   : > { %174 = dma.vmem_to_hbm [thread:$0]  %s170_s17, 16, %s172_s21, [#allocation3] }
  0xd1   : > { %s157_s15 = sadd.s32 1, %s766_s15  }
  0xd2   : > { %p156_p7 = scmp.ge.s32.totalorder %s157_s15, %s898_s14 }
  0xd4   :  { %159 = sbr.rel (!%p156_p7) target bundleno = 196 (0xc4), region = 159 }
  0xd9 PF:  { %s915_s28 = sadd.s32 %s898_s14, %s144_s9  ;;  %s358_s29 = sld [smem:[#allocation5 + $0x5]] }
  0xda   :  { %s359_s30 = sld [smem:[#allocation6 + $0x5]] }
  0xdf   :  { %p177_p8 = scmp.gt.s32.totalorder %s358_s29, 0 }
  0xe1   :  { %s1000_s29 = smov (!%p177_p8, %s358_s29), 0 }
  0xe2   :  { %s180_s4 = ssub.s32 32, %s1000_s29 }
  0xe3   :  { %p181_p9 = scmp.lt.s32.totalorder %s359_s30, %s180_s4 }
  0xe5   :  { %s1002_s30 = smov (!%p181_p9, %s359_s30), %s180_s4 }
  0xe6   :  { %p183_p10 = scmp.gt.s32.totalorder %s1002_s30, 0  ;;  %p389_p11 = scmp.le.s32.totalorder %s1002_s30, 0 }
  0xe7   :  { %s768_s6 = smov (!%p389_p11), 0  }
  0xe8   :  { %s920_s5 = scalar_select %p183_p10, %s1002_s30, 0 }
  0xe9   :  { %327 = sbr.rel (%p389_p11) target bundleno = 259 (0x103), region = 164 }
  0xee LB: > { %s792_s2 = smov [#allocation2]   ;;  %s191_s7 = sadd.s32 %s770_s6, %s1000_s29  ;;  %s770_s6 = sphi %s768_s6, %s188_s6  }
  0xef   : > { %s200_s22 = sshll.u32 %s792_s2, 4  ;;  %s192_s10 = scalar_lea.hbm %s977_s3, %s191_s7  ;;  %s201_s22 = int_to_ptr.vmem [resolvable:$true] %s200_s22 }
  0xf0   : > { %s202_s11 = sshll.u32 %s192_s10, 4  ;;  %s652_s17 = scalar_lea.hbm %s977_s3, 64  ;;  %s203_s11 = int_to_ptr.hbm [resolvable:$true] %s202_s11 }
  0xf1   : > { %s648_s13 = sshra.s32 %s203_s11, 4  ;;  %s649_s13 = int_to_ptr.hbm [resolvable:$true] %s648_s13 }
  0xf2   : > { %s650_s14 = scalar_lea.hbm %s649_s13, 1  ;;  %p653_p13 = scmp.lt.s32.totalorder %s649_s13, %s977_s3 }
  0xf3   : > { %p651_p12 = scmp.ne.s32.totalorder %s649_s13, %s650_s14  ;;  %p654_p0 = scmp.lt.s32.totalorder %s652_s17, %s650_s14 }
  0xf5   : > { %p655_p1 = por %p654_p0, %p653_p13 }
  0xf7   : > { %p656_p2 = pnand %p655_p1, %p651_p12 }
  0xf9   : > { %659 = shalt.err (!%p656_p2)  }
  0xfa   : > { %205 = dma.vmem_to_hbm [thread:$0]  %s201_s22, 16, %s203_s11, [#allocation3] }
  0xfb   : > { %s188_s6 = sadd.s32 1, %s770_s6  }
  0xfc   : > { %p187_p3 = scmp.ge.s32.totalorder %s188_s6, %s920_s5 }
  0xfe   :  { %190 = sbr.rel (!%p187_p3) target bundleno = 238 (0xee), region = 170 }
 0x103 PF:  { %s206_s20 = sadd.s32 %s920_s5, %s915_s28  ;;  %s361_s0 = sld [smem:[#allocation5 + $0x6]] }
 0x104   :  { %s362_s21 = sld [smem:[#allocation6 + $0x6]] }
 0x109   :  { %p208_p4 = scmp.gt.s32.totalorder %s361_s0, 0 }
 0x10b   :  { %s1004_s0 = smov (!%p208_p4, %s361_s0), 0 }
 0x10c   :  { %s211_s23 = ssub.s32 32, %s1004_s0 }
 0x10d   :  { %p212_p5 = scmp.lt.s32.totalorder %s362_s21, %s211_s23 }
 0x10f   :  { %s1006_s21 = smov (!%p212_p5, %s362_s21), %s211_s23 }
 0x110   :  { %p214_p6 = scmp.gt.s32.totalorder %s1006_s21, 0  ;;  %p393_p7 = scmp.le.s32.totalorder %s1006_s21, 0 }
 0x111   :  { %s772_s12 = smov (!%p393_p7), 0  }
 0x112   :  { %s938_s1 = scalar_select %p214_p6, %s1006_s21, 0 }
 0x113   :  { %332 = sbr.rel (%p393_p7) target bundleno = 301 (0x12d), region = 175 }
 0x118 LB: > { %s793_s24 = smov [#allocation2]   ;;  %s222_s26 = sadd.s32 %s774_s12, %s1004_s0  ;;  %s774_s12 = sphi %s772_s12, %s219_s12  }
 0x119   : > { %s231_s25 = sshll.u32 %s793_s24, 4  ;;  %s223_s30 = scalar_lea.hbm %s977_s3, %s222_s26  ;;  %s232_s25 = int_to_ptr.vmem [resolvable:$true] %s231_s25 }
 0x11a   : > { %s233_s4 = sshll.u32 %s223_s30, 4  ;;  %s676_s8 = scalar_lea.hbm %s977_s3, 64  ;;  %s234_s4 = int_to_ptr.hbm [resolvable:$true] %s233_s4 }
 0x11b   : > { %s672_s6 = sshra.s32 %s234_s4, 4  ;;  %s673_s6 = int_to_ptr.hbm [resolvable:$true] %s672_s6 }
 0x11c   : > { %s674_s2 = scalar_lea.hbm %s673_s6, 1  ;;  %p677_p9 = scmp.lt.s32.totalorder %s673_s6, %s977_s3 }
 0x11d   : > { %p675_p8 = scmp.ne.s32.totalorder %s673_s6, %s674_s2  ;;  %p678_p10 = scmp.lt.s32.totalorder %s676_s8, %s674_s2 }
 0x11f   : > { %p679_p11 = por %p678_p10, %p677_p9 }
 0x121   : > { %p680_p12 = pnand %p679_p11, %p675_p8 }
 0x123   : > { %683 = shalt.err (!%p680_p12)  }
 0x124   : > { %236 = dma.vmem_to_hbm [thread:$0]  %s232_s25, 16, %s234_s4, [#allocation3] }
 0x125   : > { %s219_s12 = sadd.s32 1, %s774_s12  }
 0x126   : > { %p218_p13 = scmp.ge.s32.totalorder %s219_s12, %s938_s1 }
 0x128   :  { %221 = sbr.rel (!%p218_p13) target bundleno = 280 (0x118), region = 181 }
 0x12d PF:  { %s955_s11 = sadd.s32 %s938_s1, %s206_s20  ;;  %s364_s13 = sld [smem:[#allocation5 + $0x7]] }
 0x12e   :  { %s365_s14 = sld [smem:[#allocation6 + $0x7]] }
 0x133   :  { %p239_p0 = scmp.gt.s32.totalorder %s364_s13, 0 }
 0x135   :  { %s1008_s13 = smov (!%p239_p0, %s364_s13), 0 }
 0x136   :  { %s242_s15 = ssub.s32 32, %s1008_s13 }
 0x137   :  { %p243_p1 = scmp.lt.s32.totalorder %s365_s14, %s242_s15 }
 0x139   :  { %s1010_s14 = smov (!%p243_p1, %s365_s14), %s242_s15 }
 0x13a   :  { %p245_p2 = scmp.gt.s32.totalorder %s1010_s14, 0  ;;  %p397_p3 = scmp.le.s32.totalorder %s1010_s14, 0 }
 0x13b   :  { %s776_s17 = smov (!%p397_p3), 0  }
 0x13c   :  { %s960_s16 = scalar_select %p245_p2, %s1010_s14, 0 }
 0x13d   :  { %337 = sbr.rel (%p397_p3) target bundleno = 343 (0x157), region = 186 }
 0x142 LB: > { %s794_s28 = smov [#allocation2]   ;;  %s253_s18 = sadd.s32 %s778_s17, %s1008_s13  ;;  %s778_s17 = sphi %s776_s17, %s250_s17  }
 0x143   : > { %s262_s5 = sshll.u32 %s794_s28, 4  ;;  %s254_s0 = scalar_lea.hbm %s977_s3, %s253_s18  ;;  %s263_s5 = int_to_ptr.vmem [resolvable:$true] %s262_s5 }
 0x144   : > { %s264_s21 = sshll.u32 %s254_s0, 4  ;;  %s700_s25 = scalar_lea.hbm %s977_s3, 64  ;;  %s265_s21 = int_to_ptr.hbm [resolvable:$true] %s264_s21 }
 0x145   : > { %s696_s23 = sshra.s32 %s265_s21, 4  ;;  %s697_s23 = int_to_ptr.hbm [resolvable:$true] %s696_s23 }
 0x146   : > { %s698_s1 = scalar_lea.hbm %s697_s23, 1  ;;  %p701_p5 = scmp.lt.s32.totalorder %s697_s23, %s977_s3 }
 0x147   : > { %p699_p4 = scmp.ne.s32.totalorder %s697_s23, %s698_s1  ;;  %p702_p6 = scmp.lt.s32.totalorder %s700_s25, %s698_s1 }
 0x149   : > { %p703_p7 = por %p702_p6, %p701_p5 }
 0x14b   : > { %p704_p8 = pnand %p703_p7, %p699_p4 }
 0x14d   : > { %707 = shalt.err (!%p704_p8)  }
 0x14e   : > { %267 = dma.vmem_to_hbm [thread:$0]  %s263_s5, 16, %s265_s21, [#allocation3] }
 0x14f   : > { %s250_s17 = sadd.s32 1, %s778_s17  }
 0x150   : > { %p249_p9 = scmp.ge.s32.totalorder %s250_s17, %s960_s16 }
 0x152   :  { %252 = sbr.rel (!%p249_p9) target bundleno = 322 (0x142), region = 192 }
 0x157 PF:  { %s268_s29 = sadd.s32 %s960_s16, %s955_s11 }
 0x158   :  { %p367_p10 = scmp.le.s32.totalorder %s268_s29, 0 }
 0x159   :  { %s780_s30 = smov (!%p367_p10), 0  }
 0x15a   :  { %342 = sbr.rel (%p367_p10) target bundleno = 360 (0x168), region = 197 }
 0x15f LB: > { %746 = dma.done.wait [#allocation3], 16  ;;  %s782_s30 = sphi %s780_s30, %s272_s30  }
 0x160   : > { %747 = vsyncadd [#allocation3], 4294967280  ;;  %s272_s30 = sadd.s32 1, %s782_s30  }
 0x161   : > { %p271_p11 = scmp.ge.s32.totalorder %s272_s30, %s268_s29 }
 0x163   :  { %274 = sbr.rel (!%p271_p11) target bundleno = 351 (0x15f), region = 203 }
 0x168 PF:  { %278 = vsyncmov [#allocation3] }
 0x16b   :  { %s279_s4 = vpop.sfrf %278 }
 0x16c   :  { %p368_p12 = scmp.ne.s32.totalorder %s279_s4, 0 }
 0x16e   :  { %283 = shalt.err (%p368_p12)  }

</bundles_post_ra>
